<compile_context>
chip_gen: v5e
topology: v5e:2x2
jax: 0.10.0
libtpu: 0.0.40
codegen_flags: <defaults>
</compile_context>

<pallas_src>
import itertools

import numpy as np
import jax
import jax.numpy as jnp
from jax.experimental import pallas as pl
from jax.experimental.pallas import tpu as pltpu

try:  # match the torch reference (scipy.optimize.linear_sum_assignment) if available
    from scipy.optimize import linear_sum_assignment as _scipy_lsa
except Exception:  # pragma: no cover
    _scipy_lsa = None

# matcher weights (DetrHungarianMatcher.__init__ defaults)
CLASS_COST = 1.0
BBOX_COST = 1.0
GIOU_COST = 1.0

# Approx reciprocal runs on the otherwise-idle EUP slot; one Newton-Raphson
# refinement keeps the result within ~1e-7 relative of the exact divide.
_APPROX_RECIP = True


def _recip(x):
    r = pl.reciprocal(x, approx=_APPROX_RECIP)
    if _APPROX_RECIP:
        r = r * (2.0 - x * r)  # one NR step: error ~ (rel_err)^2
    return r


def _scale(w, x):
    # fold away unit weights at trace time (saves a [tn, Tp] multiply each)
    return x if w == 1.0 else w * x


def _round_up(x, m):
    return ((x + m - 1) // m) * m


# ------------------------------ Pallas kernel --------------------------------

def _cost_matrix_kernel(logits_ref, onehot_ref, pbox_ref, tbox_t_ref, cost_ref):
    logits = logits_ref[...].astype(jnp.float32)    # [TN, C]
    onehot = onehot_ref[...].astype(jnp.float32)    # [C, Tp]
    pb = pbox_ref[...].astype(jnp.float32)          # [TN, 4]  (cx, cy, w, h)
    tbt = tbox_t_ref[...].astype(jnp.float32)       # [4, Tp]  (cx, cy, w, h) transposed

    # ---- class cost: -softmax(logits)[:, tgt] -----------------------------------
    # softmax normalisation and class weight are folded into the [TN, C] operand
    # so the MXU output IS the weighted class cost (no [TN, Tp] fixups).
    m = jnp.max(logits, axis=-1, keepdims=True)
    e = jnp.exp(logits - m)                                          # [TN, C]
    inv_s = _recip(jnp.sum(e, axis=-1, keepdims=True))               # [TN, 1]
    e_scaled = e * ((-CLASS_COST) * inv_s)                           # [TN, C]
    cost = jnp.dot(e_scaled, onehot, preferred_element_type=jnp.float32)  # [TN, Tp]

    # per-coordinate broadcast pieces
    p_cx = pb[:, 0:1]; p_cy = pb[:, 1:2]; p_w = pb[:, 2:3]; p_h = pb[:, 3:4]      # [TN, 1]
    t_cx = tbt[0:1, :]; t_cy = tbt[1:2, :]; t_w = tbt[2:3, :]; t_h = tbt[3:4, :]  # [1, Tp]

    # ---- bbox cost: L1 cdist on (cx, cy, w, h) ----------------------------------
    l1 = (jnp.abs(p_cx - t_cx) + jnp.abs(p_cy - t_cy)
          + jnp.abs(p_w - t_w) + jnp.abs(p_h - t_h))
    cost = cost + _scale(BBOX_COST, l1)

    # ---- giou cost on corner-format boxes (fused) --------------------------------
    p_x0 = p_cx - 0.5 * p_w; p_y0 = p_cy - 0.5 * p_h
    p_x1 = p_cx + 0.5 * p_w; p_y1 = p_cy + 0.5 * p_h
    t_x0 = t_cx - 0.5 * t_w; t_y0 = t_cy - 0.5 * t_h
    t_x1 = t_cx + 0.5 * t_w; t_y1 = t_cy + 0.5 * t_h

    # raw (unclamped) intersection extents
    iw = jnp.minimum(p_x1, t_x1) - jnp.maximum(p_x0, t_x0)           # [TN, Tp]
    ih = jnp.minimum(p_y1, t_y1) - jnp.maximum(p_y0, t_y0)           # [TN, Tp]
    inter = jnp.maximum(iw, 0.0) * jnp.maximum(ih, 0.0)
    union = (p_w * p_h + t_w * t_h) - inter
    # enclosing-box extents via identity: enc_ext = p_ext + t_ext - raw_inter_ext
    enc = ((p_w + t_w) - iw) * ((p_h + t_h) - ih)

    # -giou = -(inter/union - (enc - union)/enc) = 1 - inter/union - union/enc
    # TODO(synk): like the torch reference, no eps guard — degenerate zero-area
    # boxes would produce inf/nan here.
    cost = cost + _scale(GIOU_COST, 1.0 - inter * _recip(union) - union * _recip(enc))

    cost_ref[...] = cost.astype(cost_ref.dtype)


def pallas_cost_matrix(logits_flat, onehot_pad, pred_boxes_flat, target_boxes_t_pad,
                       *, tile_n=256):
    """Pairwise cost matrix [N, T_pad]; T must already be padded to 128 lanes."""
    N, C = logits_flat.shape
    Tp = onehot_pad.shape[1]
    assert Tp % 128 == 0

    # Row tile: multiple of 8, capped at ceil(N/2) so the grid has >= 2 parallel
    # steps whenever N allows (both v7x TensorCores busy + prefetch/writeback overlap).
    half = _round_up(max(-(-N // 2), 8), 8)
    tn = _round_up(min(tile_n, half), 8)
    N_pad = _round_up(N, tn)
    if N_pad != N:
        logits_flat = jnp.pad(logits_flat, ((0, N_pad - N), (0, 0)))
        pred_boxes_flat = jnp.pad(pred_boxes_flat, ((0, N_pad - N), (0, 0)))

    # Scoped-VMEM budget: double-buffered in/out tiles + elementwise temporaries.
    est = 4 * (2 * tn * Tp + 2 * C * Tp + 2 * 4 * Tp + 2 * tn * C + 2 * tn * 4
               + 8 * tn * Tp)
    vmem_limit = int(min(max(est, 16 * 1024 * 1024), 48 * 1024 * 1024))

    out = pl.pallas_call(
        _cost_matrix_kernel,
        out_shape=jax.ShapeDtypeStruct((N_pad, Tp), jnp.float32),
        grid=(N_pad // tn,),
        in_specs=[
            pl.BlockSpec((tn, C), lambda i: (i, 0)),     # row tile of logits
            pl.BlockSpec((C, Tp), lambda i: (0, 0)),     # onehot resident
            pl.BlockSpec((tn, 4), lambda i: (i, 0)),     # row tile of pred boxes
            pl.BlockSpec((4, Tp), lambda i: (0, 0)),     # target boxes resident
        ],
        out_specs=pl.BlockSpec((tn, Tp), lambda i: (i, 0)),
        compiler_params=pltpu.CompilerParams(
            dimension_semantics=("parallel",),
            vmem_limit_bytes=vmem_limit),
    )(logits_flat, onehot_pad, pred_boxes_flat, target_boxes_t_pad)
    return out[:N]


# --------------------- host-side Hungarian assignment ------------------------

def _hungarian_rows_leq_cols(cost):
    """Shortest-augmenting-path Hungarian. cost: (n, m) with n <= m.
    Returns, for each row, the assigned column."""
    cost = np.asarray(cost, dtype=np.float64)
    n, m = cost.shape
    INF = float("inf")
    u = [0.0] * (n + 1)
    v = [0.0] * (m + 1)
    p = [0] * (m + 1)        # p[j] = row matched to column j (1-indexed), 0 = free
    way = [0] * (m + 1)
    for i in range(1, n + 1):
        p[0] = i
        j0 = 0
        minv = [INF] * (m + 1)
        used = [False] * (m + 1)
        while True:
            used[j0] = True
            i0 = p[j0]
            delta = INF
            j1 = 0
            for j in range(1, m + 1):
                if not used[j]:
                    cur = cost[i0 - 1, j - 1] - u[i0] - v[j]
                    if cur < minv[j]:
                        minv[j] = cur
                        way[j] = j0
                    if minv[j] < delta:
                        delta = minv[j]
                        j1 = j
            for j in range(m + 1):
                if used[j]:
                    u[p[j]] += delta
                    v[j] -= delta
                else:
                    minv[j] -= delta
            j0 = j1
            if p[j0] == 0:
                break
        while True:
            j1 = way[j0]
            p[j0] = p[j1]
            j0 = j1
            if j0 == 0:
                break
    row_to_col = np.zeros(n, dtype=np.int64)
    for j in range(1, m + 1):
        if p[j] != 0:
            row_to_col[p[j] - 1] = j - 1
    return row_to_col


def linear_sum_assignment_np(cost):
    """Rectangular min-cost assignment (scipy.linear_sum_assignment equivalent)."""
    cost = np.asarray(cost, dtype=np.float64)
    if _scipy_lsa is not None:
        r, c = _scipy_lsa(cost)
        return np.asarray(r, dtype=np.int64), np.asarray(c, dtype=np.int64)
    if cost.shape[0] <= cost.shape[1]:
        col = _hungarian_rows_leq_cols(cost)
        row = np.arange(cost.shape[0], dtype=np.int64)
        return row, col
    col = _hungarian_rows_leq_cols(cost.T)          # assigns each original column a row
    row_ind = col.astype(np.int64)
    col_ind = np.arange(cost.shape[1], dtype=np.int64)
    order = np.argsort(row_ind, kind="stable")
    return row_ind[order], col_ind[order]


def _brute_force_min_cost(c):
    c = np.asarray(c, dtype=np.float64)
    n_rows, n_cols = c.shape
    assert n_cols <= n_rows
    best = np.inf
    for rows in itertools.permutations(range(n_rows), n_cols):
        best = min(best, sum(c[r, j] for j, r in enumerate(rows)))
    return best


# ------------------------------- matcher --------------------------------------

def detr_hungarian_matcher(outputs, targets, *, tile_n=256):
    """outputs: {'logits': [B,Q,C], 'pred_boxes': [B,Q,4]}; targets: list of dicts."""
    logits = outputs["logits"]
    pred_boxes = outputs["pred_boxes"]
    B, Q, C = logits.shape

    target_ids = jnp.concatenate([t["class_labels"] for t in targets])      # [T]
    target_bbox = jnp.concatenate([t["boxes"] for t in targets]).astype(jnp.float32)
    T = int(target_ids.shape[0])
    Tp = _round_up(max(T, 1), 128)           # lane-dense output (128-multiple)

    logits_flat = logits.reshape(B * Q, C).astype(jnp.float32)
    pred_flat = pred_boxes.reshape(B * Q, 4).astype(jnp.float32)

    onehot = jax.nn.one_hot(target_ids, C, dtype=jnp.float32).T             # [C, T]
    onehot = jnp.pad(onehot, ((0, 0), (0, Tp - T)))                         # zero class cost in pad
    tbox_t = target_bbox.T                                                  # [4, T]
    if Tp > T:
        # pad with valid positive-area boxes so the giou math stays finite
        pad_cols = jnp.tile(jnp.array([[0.5], [0.5], [1.0], [1.0]], jnp.float32),
                            (1, Tp - T))
        tbox_t = jnp.concatenate([tbox_t, pad_cols], axis=1)

    cost = pallas_cost_matrix(logits_flat, onehot, pred_flat, tbox_t, tile_n=tile_n)
    cost = jax.block_until_ready(cost)
    cost_np = np.asarray(cost)[:, :T].reshape(B, Q, T)

    # TODO(synk): Hungarian assignment is a sequential combinatorial algorithm with
    # no Pallas equivalent; solved on host (scipy if present, else numpy SAP solver).
    sizes = [int(t["boxes"].shape[0]) for t in targets]
    indices = []
    offset = 0
    for i, s in enumerate(sizes):
        block = cost_np[i, :, offset:offset + s]
        indices.append(linear_sum_assignment_np(block))
        offset += s
    return indices, cost_np


# ------------------------------ pure-JAX reference -----------------------------

def _reference_cost_matrix(logits_flat, target_ids, pred_boxes_flat, target_bbox):
    prob = jax.nn.softmax(logits_flat.astype(jnp.float32), axis=-1)
    class_cost = -prob[:, target_ids]
    bbox_cost = jnp.abs(pred_boxes_flat[:, None, :] - target_bbox[None, :, :]).sum(-1)

    def to_corners(b):
        cx, cy, w, h = b[:, 0], b[:, 1], b[:, 2], b[:, 3]
        return jnp.stack([cx - 0.5 * w, cy - 0.5 * h, cx + 0.5 * w, cy + 0.5 * h], axis=-1)

    b1 = to_corners(pred_boxes_flat)
    b2 = to_corners(target_bbox)
    area1 = (b1[:, 2] - b1[:, 0]) * (b1[:, 3] - b1[:, 1])
    area2 = (b2[:, 2] - b2[:, 0]) * (b2[:, 3] - b2[:, 1])
    lt = jnp.maximum(b1[:, None, :2], b2[None, :, :2])
    rb = jnp.minimum(b1[:, None, 2:], b2[None, :, 2:])
    wh = jnp.clip(rb - lt, 0.0)
    inter = wh[:, :, 0] * wh[:, :, 1]
    union = area1[:, None] + area2[None, :] - inter
    iou = inter / union
    tl = jnp.minimum(b1[:, None, :2], b2[None, :, :2])
    br = jnp.maximum(b1[:, None, 2:], b2[None, :, 2:])
    wh2 = jnp.clip(br - tl, 0.0)
    enc = wh2[:, :, 0] * wh2[:, :, 1]
    giou = iou - (enc - union) / enc
    return BBOX_COST * bbox_cost + CLASS_COST * class_cost + GIOU_COST * (-giou)


# ----------------------------------- main --------------------------------------

if __name__ == "__main__":
    B, Q, C = 2, 8, 8          # batch, num_queries, num_classes
    sizes = [3, 2]             # num_target_boxes per batch element

    key = jax.random.PRNGKey(0)
    k1, k2, k3, k4, k5 = jax.random.split(key, 5)

    logits = jax.random.normal(k1, (B, Q, C), dtype=jnp.float32)
    pred_centers = jax.random.uniform(k2, (B, Q, 2), minval=0.2, maxval=0.8)
    pred_wh = jax.random.uniform(k3, (B, Q, 2), minval=0.05, maxval=0.3)
    pred_boxes = jnp.concatenate([pred_centers, pred_wh], axis=-1)

    targets = []
    kk = [k4, k5]
    for i, s in enumerate(sizes):
        ka, kb, kc = jax.random.split(kk[i], 3)
        labels = jax.random.randint(ka, (s,), 0, C)
        centers = jax.random.uniform(kb, (s, 2), minval=0.2, maxval=0.8)
        wh = jax.random.uniform(kc, (s, 2), minval=0.05, maxval=0.3)
        targets.append({"class_labels": labels,
                        "boxes": jnp.concatenate([centers, wh], axis=-1)})

    outputs = {"logits": logits, "pred_boxes": pred_boxes}

    # tile_n=8 forces a multi-tile grid even at this toy size (exercises the tiling).
    indices, cost_np = detr_hungarian_matcher(outputs, targets, tile_n=8)

    # verify kernel cost matrix against a pure-JAX reference
    target_ids = jnp.concatenate([t["class_labels"] for t in targets])
    target_bbox = jnp.concatenate([t["boxes"] for t in targets])
    ref = _reference_cost_matrix(logits.reshape(B * Q, C), target_ids,
                                 pred_boxes.reshape(B * Q, 4), target_bbox)
    ref_np = np.asarray(jax.block_until_ready(ref)).reshape(B, Q, -1)
    assert np.allclose(cost_np, ref_np, rtol=1e-4, atol=1e-4), "cost matrix mismatch"

    # verify assignments: correct length and optimal total cost (vs. brute force).
    # NOTE: both sums are computed in float64 — the previous float32-vs-float64
    # comparison at 1e-9 tolerance tripped on summation rounding, not optimality.
    offset = 0
    for i, ((ri, ci), s) in enumerate(zip(indices, sizes)):
        assert len(ri) == len(ci) == min(Q, s)
        block64 = cost_np[i, :, offset:offset + s].astype(np.float64)
        got = float(block64[ri, ci].sum())
        best = _brute_force_min_cost(block64)
        assert got <= best + 1e-6, "assignment not optimal"
        offset += s

    print("KERNEL_OK")
</pallas_src>

<mosaic_0001>
module attributes {stable_mosaic.version = 11 : i64} {
  func.func @_cost_matrix_kernel(%arg0: i32, %arg1: memref<8x8xf32, #tpu.memory_space<vmem>>, %arg2: memref<8x128xf32, #tpu.memory_space<vmem>>, %arg3: memref<8x4xf32, #tpu.memory_space<vmem>>, %arg4: memref<4x128xf32, #tpu.memory_space<vmem>>, %arg5: memref<8x128xf32, #tpu.memory_space<vmem>>) attributes {dimension_semantics = [#tpu.dimension_semantics<parallel>], iteration_bounds = array<i64: 2>, scalar_prefetch = 0 : i64, scratch_operands = 0 : i64, tpu.core_type = #tpu.core_type<tc>, window_params = [{transform_indices = @transform_0, window_bounds = array<i64: 8, 8>}, {pipeline_mode = #tpu.pipeline_mode<synchronous>, transform_indices = @transform_1, window_bounds = array<i64: 8, 128>}, {transform_indices = @transform_2, window_bounds = array<i64: 8, 4>}, {pipeline_mode = #tpu.pipeline_mode<synchronous>, transform_indices = @transform_3, window_bounds = array<i64: 4, 128>}, {transform_indices = @transform_4, window_bounds = array<i64: 8, 128>}]} {
    %c0 = arith.constant 0 : index
    %c0_0 = arith.constant 0 : index
    %0 = vector.load %arg1[%c0, %c0_0] : memref<8x8xf32, #tpu.memory_space<vmem>>, vector<8x8xf32>
    %c0_1 = arith.constant 0 : index
    %c0_2 = arith.constant 0 : index
    %1 = vector.load %arg2[%c0_1, %c0_2] : memref<8x128xf32, #tpu.memory_space<vmem>>, vector<8x128xf32>
    %c0_3 = arith.constant 0 : index
    %c0_4 = arith.constant 0 : index
    %2 = vector.load %arg3[%c0_3, %c0_4] : memref<8x4xf32, #tpu.memory_space<vmem>>, vector<8x4xf32>
    %c0_5 = arith.constant 0 : index
    %c0_6 = arith.constant 0 : index
    %3 = vector.load %arg4[%c0_5, %c0_6] : memref<4x128xf32, #tpu.memory_space<vmem>>, vector<4x128xf32>
    %cst = arith.constant dense<0xFF800000> : vector<8xf32>
    %4 = vector.multi_reduction <maximumf>, %0, %cst [1] : vector<8x8xf32> to vector<8xf32>
    %5 = vector.shape_cast %4 : vector<8xf32> to vector<8x1xf32>
    %6 = vector.broadcast %5 : vector<8x1xf32> to vector<8x8xf32>
    %7 = arith.subf %0, %6 : vector<8x8xf32>
    %8 = math.exp %7 : vector<8x8xf32>
    %cst_7 = arith.constant dense<0.000000e+00> : vector<8xf32>
    %9 = vector.multi_reduction <add>, %8, %cst_7 [1] : vector<8x8xf32> to vector<8xf32>
    %10 = vector.shape_cast %9 : vector<8xf32> to vector<8x1xf32>
    %11 = tpu.reciprocal %10 {approx = true} : vector<8x1xf32> -> vector<8x1xf32>
    %12 = arith.mulf %10, %11 : vector<8x1xf32>
    %cst_8 = arith.constant 2.000000e+00 : f32
    %13 = vector.broadcast %cst_8 : f32 to vector<8x1xf32>
    %14 = arith.subf %13, %12 : vector<8x1xf32>
    %15 = arith.mulf %11, %14 : vector<8x1xf32>
    %cst_9 = arith.constant -1.000000e+00 : f32
    %16 = vector.broadcast %cst_9 : f32 to vector<8x1xf32>
    %17 = arith.mulf %16, %15 : vector<8x1xf32>
    %18 = vector.broadcast %17 : vector<8x1xf32> to vector<8x8xf32>
    %19 = arith.mulf %8, %18 : vector<8x8xf32>
    %cst_10 = arith.constant dense<0.000000e+00> : vector<8x128xf32>
    %20 = tpu.matmul %19, %1, %cst_10 {dimension_numbers = #tpu.dot_dimension_numbers<[1], [0], [0], [1], [0, 0, 1, 1], [], []>} : vector<8x8xf32>, vector<8x128xf32>, vector<8x128xf32> -> vector<8x128xf32>
    %21 = vector.extract_strided_slice %2 {offsets = [0, 0], sizes = [8, 1], strides = [1, 1]} : vector<8x4xf32> to vector<8x1xf32>
    %22 = vector.extract_strided_slice %2 {offsets = [0, 1], sizes = [8, 1], strides = [1, 1]} : vector<8x4xf32> to vector<8x1xf32>
    %23 = vector.extract_strided_slice %2 {offsets = [0, 2], sizes = [8, 1], strides = [1, 1]} : vector<8x4xf32> to vector<8x1xf32>
    %24 = vector.extract_strided_slice %2 {offsets = [0, 3], sizes = [8, 1], strides = [1, 1]} : vector<8x4xf32> to vector<8x1xf32>
    %25 = vector.extract_strided_slice %3 {offsets = [0, 0], sizes = [1, 128], strides = [1, 1]} : vector<4x128xf32> to vector<1x128xf32>
    %26 = vector.extract_strided_slice %3 {offsets = [1, 0], sizes = [1, 128], strides = [1, 1]} : vector<4x128xf32> to vector<1x128xf32>
    %27 = vector.extract_strided_slice %3 {offsets = [2, 0], sizes = [1, 128], strides = [1, 1]} : vector<4x128xf32> to vector<1x128xf32>
    %28 = vector.extract_strided_slice %3 {offsets = [3, 0], sizes = [1, 128], strides = [1, 1]} : vector<4x128xf32> to vector<1x128xf32>
    %29 = vector.broadcast %21 : vector<8x1xf32> to vector<8x128xf32>
    %30 = vector.broadcast %25 : vector<1x128xf32> to vector<8x128xf32>
    %31 = arith.subf %29, %30 : vector<8x128xf32>
    %32 = math.absf %31 : vector<8x128xf32>
    %33 = vector.broadcast %22 : vector<8x1xf32> to vector<8x128xf32>
    %34 = vector.broadcast %26 : vector<1x128xf32> to vector<8x128xf32>
    %35 = arith.subf %33, %34 : vector<8x128xf32>
    %36 = math.absf %35 : vector<8x128xf32>
    %37 = arith.addf %32, %36 : vector<8x128xf32>
    %38 = vector.broadcast %23 : vector<8x1xf32> to vector<8x128xf32>
    %39 = vector.broadcast %27 : vector<1x128xf32> to vector<8x128xf32>
    %40 = arith.subf %38, %39 : vector<8x128xf32>
    %41 = math.absf %40 : vector<8x128xf32>
    %42 = arith.addf %37, %41 : vector<8x128xf32>
    %43 = vector.broadcast %24 : vector<8x1xf32> to vector<8x128xf32>
    %44 = vector.broadcast %28 : vector<1x128xf32> to vector<8x128xf32>
    %45 = arith.subf %43, %44 : vector<8x128xf32>
    %46 = math.absf %45 : vector<8x128xf32>
    %47 = arith.addf %42, %46 : vector<8x128xf32>
    %48 = arith.addf %20, %47 : vector<8x128xf32>
    %cst_11 = arith.constant 5.000000e-01 : f32
    %49 = vector.broadcast %cst_11 : f32 to vector<8x1xf32>
    %50 = arith.mulf %49, %23 : vector<8x1xf32>
    %51 = arith.subf %21, %50 : vector<8x1xf32>
    %cst_12 = arith.constant 5.000000e-01 : f32
    %52 = vector.broadcast %cst_12 : f32 to vector<8x1xf32>
    %53 = arith.mulf %52, %24 : vector<8x1xf32>
    %54 = arith.subf %22, %53 : vector<8x1xf32>
    %cst_13 = arith.constant 5.000000e-01 : f32
    %55 = vector.broadcast %cst_13 : f32 to vector<8x1xf32>
    %56 = arith.mulf %55, %23 : vector<8x1xf32>
    %57 = arith.addf %21, %56 : vector<8x1xf32>
    %cst_14 = arith.constant 5.000000e-01 : f32
    %58 = vector.broadcast %cst_14 : f32 to vector<8x1xf32>
    %59 = arith.mulf %58, %24 : vector<8x1xf32>
    %60 = arith.addf %22, %59 : vector<8x1xf32>
    %cst_15 = arith.constant 5.000000e-01 : f32
    %61 = vector.broadcast %cst_15 : f32 to vector<1x128xf32>
    %62 = arith.mulf %61, %27 : vector<1x128xf32>
    %63 = arith.subf %25, %62 : vector<1x128xf32>
    %cst_16 = arith.constant 5.000000e-01 : f32
    %64 = vector.broadcast %cst_16 : f32 to vector<1x128xf32>
    %65 = arith.mulf %64, %28 : vector<1x128xf32>
    %66 = arith.subf %26, %65 : vector<1x128xf32>
    %cst_17 = arith.constant 5.000000e-01 : f32
    %67 = vector.broadcast %cst_17 : f32 to vector<1x128xf32>
    %68 = arith.mulf %67, %27 : vector<1x128xf32>
    %69 = arith.addf %25, %68 : vector<1x128xf32>
    %cst_18 = arith.constant 5.000000e-01 : f32
    %70 = vector.broadcast %cst_18 : f32 to vector<1x128xf32>
    %71 = arith.mulf %70, %28 : vector<1x128xf32>
    %72 = arith.addf %26, %71 : vector<1x128xf32>
    %73 = vector.broadcast %57 : vector<8x1xf32> to vector<8x128xf32>
    %74 = vector.broadcast %69 : vector<1x128xf32> to vector<8x128xf32>
    %75 = arith.minimumf %73, %74 : vector<8x128xf32>
    %76 = vector.broadcast %51 : vector<8x1xf32> to vector<8x128xf32>
    %77 = vector.broadcast %63 : vector<1x128xf32> to vector<8x128xf32>
    %78 = arith.maximumf %76, %77 : vector<8x128xf32>
    %79 = arith.subf %75, %78 : vector<8x128xf32>
    %80 = vector.broadcast %60 : vector<8x1xf32> to vector<8x128xf32>
    %81 = vector.broadcast %72 : vector<1x128xf32> to vector<8x128xf32>
    %82 = arith.minimumf %80, %81 : vector<8x128xf32>
    %83 = vector.broadcast %54 : vector<8x1xf32> to vector<8x128xf32>
    %84 = vector.broadcast %66 : vector<1x128xf32> to vector<8x128xf32>
    %85 = arith.maximumf %83, %84 : vector<8x128xf32>
    %86 = arith.subf %82, %85 : vector<8x128xf32>
    %cst_19 = arith.constant 0.000000e+00 : f32
    %87 = vector.broadcast %cst_19 : f32 to vector<8x128xf32>
    %88 = arith.maximumf %79, %87 : vector<8x128xf32>
    %cst_20 = arith.constant 0.000000e+00 : f32
    %89 = vector.broadcast %cst_20 : f32 to vector<8x128xf32>
    %90 = arith.maximumf %86, %89 : vector<8x128xf32>
    %91 = arith.mulf %88, %90 : vector<8x128xf32>
    %92 = arith.mulf %23, %24 : vector<8x1xf32>
    %93 = arith.mulf %27, %28 : vector<1x128xf32>
    %94 = vector.broadcast %92 : vector<8x1xf32> to vector<8x128xf32>
    %95 = vector.broadcast %93 : vector<1x128xf32> to vector<8x128xf32>
    %96 = arith.addf %94, %95 : vector<8x128xf32>
    %97 = arith.subf %96, %91 : vector<8x128xf32>
    %98 = vector.broadcast %23 : vector<8x1xf32> to vector<8x128xf32>
    %99 = vector.broadcast %27 : vector<1x128xf32> to vector<8x128xf32>
    %100 = arith.addf %98, %99 : vector<8x128xf32>
    %101 = arith.subf %100, %79 : vector<8x128xf32>
    %102 = vector.broadcast %24 : vector<8x1xf32> to vector<8x128xf32>
    %103 = vector.broadcast %28 : vector<1x128xf32> to vector<8x128xf32>
    %104 = arith.addf %102, %103 : vector<8x128xf32>
    %105 = arith.subf %104, %86 : vector<8x128xf32>
    %106 = arith.mulf %101, %105 : vector<8x128xf32>
    %107 = tpu.reciprocal %97 {approx = true} : vector<8x128xf32> -> vector<8x128xf32>
    %108 = arith.mulf %97, %107 : vector<8x128xf32>
    %cst_21 = arith.constant 2.000000e+00 : f32
    %109 = vector.broadcast %cst_21 : f32 to vector<8x128xf32>
    %110 = arith.subf %109, %108 : vector<8x128xf32>
    %111 = arith.mulf %107, %110 : vector<8x128xf32>
    %112 = arith.mulf %91, %111 : vector<8x128xf32>
    %cst_22 = arith.constant 1.000000e+00 : f32
    %113 = vector.broadcast %cst_22 : f32 to vector<8x128xf32>
    %114 = arith.subf %113, %112 : vector<8x128xf32>
    %115 = tpu.reciprocal %106 {approx = true} : vector<8x128xf32> -> vector<8x128xf32>
    %116 = arith.mulf %106, %115 : vector<8x128xf32>
    %cst_23 = arith.constant 2.000000e+00 : f32
    %117 = vector.broadcast %cst_23 : f32 to vector<8x128xf32>
    %118 = arith.subf %117, %116 : vector<8x128xf32>
    %119 = arith.mulf %115, %118 : vector<8x128xf32>
    %120 = arith.mulf %97, %119 : vector<8x128xf32>
    %121 = arith.subf %114, %120 : vector<8x128xf32>
    %122 = arith.addf %48, %121 : vector<8x128xf32>
    %c0_24 = arith.constant 0 : index
    %c0_25 = arith.constant 0 : index
    %123 = vector.load %arg5[%c0_24, %c0_25] : memref<8x128xf32, #tpu.memory_space<vmem>>, vector<8x128xf32>
    tpu.vector_store %arg5[%c0_24, %c0_25], %122 {strides = array<i32>} : memref<8x128xf32, #tpu.memory_space<vmem>>, vector<8x128xf32>,
    return
  }
  func.func @transform_0(%arg0: i32) -> (i32, i32) {
    %c0_i32 = arith.constant 0 : i32
    %c0_i32_0 = arith.constant 0 : i32
    return %arg0, %c0_i32 : i32, i32
  }
  func.func @transform_1(%arg0: i32) -> (i32, i32) {
    %c0_i32 = arith.constant 0 : i32
    %c0_i32_0 = arith.constant 0 : i32
    %c0_i32_1 = arith.constant 0 : i32
    return %c0_i32, %c0_i32_0 : i32, i32
  }
  func.func @transform_2(%arg0: i32) -> (i32, i32) {
    %c0_i32 = arith.constant 0 : i32
    %c0_i32_0 = arith.constant 0 : i32
    return %arg0, %c0_i32 : i32, i32
  }
  func.func @transform_3(%arg0: i32) -> (i32, i32) {
    %c0_i32 = arith.constant 0 : i32
    %c0_i32_0 = arith.constant 0 : i32
    %c0_i32_1 = arith.constant 0 : i32
    return %c0_i32, %c0_i32_0 : i32, i32
  }
  func.func @transform_4(%arg0: i32) -> (i32, i32) {
    %c0_i32 = arith.constant 0 : i32
    %c0_i32_0 = arith.constant 0 : i32
    return %arg0, %c0_i32 : i32, i32
  }
}

</mosaic_0001>

<bundles_post_ra>
// kernel: tpu_custom_call.1
= control target key start
LH: loop header
LB: loop body
LE: loop exit
PB: predicated region body
PF: predicated region fallthrough
CT: control target
= control target key end

     0   :  { %9 = vsyncpa [#allocation3], 0  ;;  %s716_s0 = inlined_call_operand.vmem [shape: f32[16,8], index: 0, kind: input, shape index: {}]   ;;  %s717_s1 = inlined_call_operand.vmem [shape: f32[8,128], index: 1, kind: input, shape index: {}]   ;;  %s718_s2 = inlined_call_operand.vmem [shape: f32[16,4], index: 2, kind: input, shape index: {}]   ;;  %s719_s3 = inlined_call_operand.vmem [shape: f32[4,128], index: 3, kind: input, shape index: {}]   ;;  %s720_s4 = inlined_call_operand.hbm [shape: f32[16,128], index: 4, kind: output, shape index: {}]  }
   0x1   :  { %11 = vsyncpa [#allocation3 + $0x1], 0  ;;  %s619_s15 = smov 0   ;;  %s621_s16 = smov 0  }
   0x2   :  { %s623_s17 = smov 0   ;;  %s625_s18 = smov 0  }
   0x3 LB: > { %s640_s19 = sadd.s32 4294967295, %s586_s18   ;;  %s451_s20 = sadd.s32 4294967294, %s586_s18   ;;  %s586_s18 = sphi %s625_s18, %s726_s18   ;;  %s582_s17 = sphi %s623_s17, %s725_s17   ;;  %s578_s16 = sphi %s621_s16, %s724_s16   ;;  %s574_s15 = sphi %s619_s15, %s723_s15  }
   0x4   : > { %s644_s21 = sadd.s32 1, %s586_s18   ;;  %s118_s22 = sadd.s32 1, %s582_s17 }
   0x5   : > { %s115_s23 = ssub.s32 %s586_s18, %s644_s21  ;;  %p128_p0 = scmp.ne.s32.totalorder %s582_s17, %s578_s16 }
   0x6   : > { %p116_p1 = scmp.eq.s32.totalorder %s115_s23, 0  ;;  %p129_p2 = scmp.eq.s32.totalorder %s640_s19, 1 }
   0x7   : > { %p134_p3 = scmp.ne.s32.totalorder %s578_s16, %s574_s15  ;;  %p135_p4 = scmp.eq.s32.totalorder %s451_s20, 1 }
   0x8   : > { %s655_s24 = scalar_select %p116_p1, %s582_s17, %s118_s22  }
   0x9   : > { %p657_p5 = por %p129_p2, %p128_p0  ;;  %p661_p6 = por %p135_p4, %p134_p3 }
   0xa   : > { %p454_p7 = scmp.ge.s32.totalorder %s586_s18, 1  ;;  %p173_p8 = scmp.lt.s32.totalorder %s586_s18, 3 }
   0xc   : > { %p174_p9 = pnand %p454_p7, %p173_p8 }
   0xd   : > { %p202_p10 = scmp.lt.s32.totalorder (!%p174_p9), %s640_s19, 1  ;;  %s588_s9 = smov (!%p174_p9), 126  }
   0xe   : > { %177 = sbr.rel (%p174_p9) target bundleno = 419 (0x1a3), region = 36  ;;  %s589_s10 = smov (!%p174_p9), 127  }
   0xf   : > { %s199_s20 = sand.u32 (!%p174_p9), 1, %s578_s16   ;;  %s460_s23 = sshll.u32 (!%p174_p9), %s640_s19, 3 }
  0x10   : > { %s455_s22 = sshll.u32 (!%p174_p9), %s199_s20, 3  ;;  %s375_s29 = scalar_lea.hbm (!%p174_p9), %s720_s4, %s460_s23 }
  0x11   : > { %s201_s30 = scalar_lea.vmem (!%p174_p9), [#allocation2], %s455_s22  ;;  %s379_s6 = sshll.u32 (!%p174_p9), %s375_s29, 4  ;;  %s380_s6 = int_to_ptr.hbm [resolvable:$true] %s379_s6 }
  0x12   : > { %s538_s7 = sshra.s32 (!%p174_p9), %s380_s6, 4  ;;  %s544_s11 = scalar_lea.hbm (!%p174_p9), %s720_s4, 16  ;;  %s539_s7 = int_to_ptr.hbm [resolvable:$true] %s538_s7 }
  0x13   : > { %s203_s27 = scalar_select %p202_p10, %s640_s19, 1  ;;  %vm214_vm0 = vcmask 64512   ;;  %v590_v4 = vmov 1   ;;  %v591_v10 = vmov 0   ;;  %v592_v13 = vmov 3   ;;  %v211_v18 = vld [vmem:[%s717_s1] sm:$0xff] }
  0x14   : > { %510 = vset.pattern.permute.xlu1 %v590_v4  ;;  %509 = vset.pattern.permute.xlu0 %v590_v4  ;;  %v593_v15 = vmov 2   ;;  %v213_v27 = vld [vmem:[%s719_s3] sm:$0xf]  ;;  %s365_s19 = scalar_lea.sflag [#allocation3], %s199_s20  ;;  %p545_p0 = scmp.lt.s32.totalorder %s539_s7, %s720_s4 }
  0x15   : > { %s456_s28 = sshll.u32 %s203_s27, 3  ;;  %508 = vset.pattern.permute.xlu2 %v591_v10  ;;  %280 = vmatpush.msra.mxu0 %v211_v18  ;;  %v292_v28 = vmul.f32 0.5, %v213_v27  ;;  %v334_v40 = vrot.slane %v213_v27, 1  ;;  %v250_v48 = vperm.slane %v213_v27, 2  ;;  %v258_v52 = vperm.slane %v213_v27, 3 }
  0x16   : > { %s205_s5 = scalar_lea.vmem %s716_s0, %s456_s28  ;;  %s209_s8 = scalar_lea.vmem %s718_s2, %s456_s28 }
  0x17   : > { %v210_v0 = vld [vmem:[%s205_s5] sm:$0xff]  ;;  %v294_v29 = vrot.slane %v292_v28, 2  ;;  %v336_v47 = vmul.f32 %v334_v40, %v213_v27  ;;  %s377_s5 = sshll.u32 %s201_s30, 4  ;;  %s378_s5 = int_to_ptr.vmem [resolvable:$true] %s377_s5 }
  0x18   : > { %v212_v1 = vld [vmem:[%s209_s8] sm:$0xff]  ;;  %v215_v2 = vsel %vm214_vm0, %v210_v0, -inf  ;;  %s540_s8 = scalar_lea.hbm %s539_s7, 8 }
  0x19   : > { %v285_v3 = vmul.f32 0.5, %v212_v1  ;;  %216 = vmax.xlane.f32.xlu0 %v215_v2  ;;  %v297_v31 = vadd.f32 %v294_v29, %v213_v27  ;;  %v296_v32 = vsub.f32 %v213_v27, %v294_v29  ;;  %v342_v51 = vperm.slane %v336_v47, 2  ;;  %p541_p11 = scmp.ne.s32.totalorder %s539_s7, %s540_s8  ;;  %p546_p1 = scmp.lt.s32.totalorder %s544_s11, %s540_s8 }
  0x1b   : > { %287 = vrot.lane.b32.xlu1 %v285_v3, %s588_s9  ;;  %v303_v33 = vperm.slane %v297_v31, 0  ;;  %v310_v34 = vperm.slane %v296_v32, 0  ;;  %v323_v35 = vperm.slane %v296_v32, 1  ;;  %v317_v36 = vperm.slane %v297_v31, 1  ;;  %p542_p12 = pnand %p541_p11, %p657_p5  ;;  %p547_p2 = por %p546_p1, %p545_p0 }
  0x1d   : > { %p543_p13 = pneg %p542_p12 }
  0x1f   : > { %p548_p3 = pnand %p547_p2, %p543_p13 }
  0x23   : > { %329 = vrot.lane.b32.xlu1 %v212_v1, %s589_s10 }
  0x8c   : > { %v217_v5 = vpop.xlane.xlu0 %216 }
  0x8d   : > { %v288_v6 = vpop.permute.xlu1 %287  ;;  %v218_v7 = vsub.f32 %v210_v0, %v217_v5  ;;  %v242_v0 = vperm.slane %v213_v27, 1 }
  0x8e   : > { %v290_v8 = vsub.f32 %v212_v1, %v288_v6  ;;  %v291_v9 = vadd.f32 %v288_v6, %v212_v1 }
  0x8f   : > { %v219_v11 = vmul.f32 1.442695, %v218_v7 }
  0x90   : > { %320 = vperm.xlu1 %510, %v290_v8   ;;  %300 = vperm.xlu2 %508, %v291_v9  }
  0x91   : > { %516 = vpow2.f32 %v219_v11 }
  0x95   : > { %v330_v16 = vpop.permute.xlu1 %329 }
  0x96   : > { %v332_v17 = vmul.f32 %v330_v16, %v212_v1 }
  0x97   : > { %v517_v12 = vpop.eup %516 }
  0x98   : > { %512 = vset.pattern.permute.xlu1 %v592_v13  ;;  %307 = vperm.xlu2 %508, %v290_v8   ;;  %v221_v14 = vsel %vm214_vm0, %v517_v12, 0.0 }
  0x99   : > { %255 = vperm.xlu1 %512, %v212_v1   ;;  %222 = vadd.xlane.f32.xlu0 %v221_v14 }
  0xa0   : > { %511 = vset.pattern.permute.xlu2 %v593_v15 }
  0xa1   : > { %247 = vperm.xlu2 %511, %v212_v1   ;;  %513 = vset.pattern.permute.xlu1 %v591_v10 }
  0xa2   : > { %232 = vperm.xlu1 %513, %v212_v1  }
  0xa9   : > { %339 = vperm.xlu2 %511, %v332_v17  }
  0xad   : > { %314 = vperm.xlu0 %509, %v291_v9  }
  0xb1   : > { %514 = vset.pattern.permute.xlu2 %v590_v4 }
  0xb2   : > { %239 = vperm.xlu2 %514, %v212_v1   ;;  %v235_v1 = vperm.slane %v213_v27, 0 }
  0xb5   : > { %515 = vset.pattern.permute.xlu0 %v593_v15 }
  0xea   : > { %v301_v26 = vpop.permute.xlu2 %300 }
  0xeb   : > { %v304_v41 = vmin.f32 %v301_v26, %v303_v33 }
  0xf2   : > { %v308_v30 = vpop.permute.xlu2 %307 }
  0xf3   : > { %v311_v42 = vmax.f32 %v308_v30, %v310_v34 }
  0xf5   : > { %v312_v45 = vsub.f32 %v304_v41, %v311_v42 }
  0xf7   : > { %v326_v49 = vmax.f32 %v312_v45, 0.0 }
  0xfb   : > { %v248_v38 = vpop.permute.xlu2 %247 }
  0xfc   : > { %v345_v55 = vadd.f32 %v250_v48, %v248_v38  ;;  %v251_v10 = vsub.f32 %v248_v38, %v250_v48 }
  0xfe   : > { %v346_v59 = vsub.f32 %v345_v55, %v312_v45  ;;  %v252_v15 = vand.u32 2147483647, %v251_v10 }
 0x102   : > { %v321_v39 = vpop.permute.xlu1 %320 }
 0x103   : > { %v324_v43 = vmax.f32 %v321_v39, %v323_v35  ;;  %v340_v53 = vpop.permute.xlu2 %339 }
 0x104   : > { %v343_v57 = vadd.f32 %v342_v51, %v340_v53 }
 0x10b   : > { %v256_v54 = vpop.permute.xlu1 %255 }
 0x10c   : > { %v223_v19 = vpop.xlane.xlu0 %222  ;;  %v347_v58 = vadd.f32 %v258_v52, %v256_v54  ;;  %v240_v2 = vpop.permute.xlu2 %239  ;;  %v259_v16 = vsub.f32 %v256_v54, %v258_v52 }
 0x10d   : > { %518 = vrcp.f32 %v223_v19  ;;  %v243_v6 = vsub.f32 %v240_v2, %v242_v0 }
 0x10f   : > { %v244_v11 = vand.u32 2147483647, %v243_v6 }
 0x113   : > { %v519_v20 = vpop.eup %518 }
 0x114   : > { %v225_v21 = vmul.f32 %v519_v20, %v223_v19  ;;  %v233_v3 = vpop.permute.xlu1 %232 }
 0x115   : > { %v236_v7 = vsub.f32 %v233_v3, %v235_v1 }
 0x116   : > { %v226_v22 = vsub.f32 2.0, %v225_v21 }
 0x118   : > { %v227_v23 = vmul.f32 %v519_v20, %v226_v22  ;;  %v260_v20 = vand.u32 2147483647, %v259_v16 }
 0x11a   : > { %v228_v24 = vmul.f32 -1.0, %v227_v23 }
 0x11c   : > { %v229_v25 = vmul.f32 %v517_v12, %v228_v24  ;;  %v237_v12 = vand.u32 2147483647, %v236_v7 }
 0x11e   : > { %458 = vmatmul.msk.f32.vlgmr.msra.gmra.mxu0 %vm214_vm0, %v229_v25  ;;  %v245_v17 = vadd.f32 %v244_v11, %v237_v12 }
 0x11f   : > { %v315_v37 = vpop.permute.xlu0 %314 }
 0x120   : > { %v318_v44 = vmin.f32 %v315_v37, %v317_v36  ;;  %v253_v21 = vadd.f32 %v252_v15, %v245_v17 }
 0x122   : > { %v325_v46 = vsub.f32 %v318_v44, %v324_v43  ;;  %v261_v24 = vadd.f32 %v260_v20, %v253_v21 }
 0x124   : > { %v327_v50 = vmax.f32 %v325_v46, 0.0  ;;  %v348_v61 = vsub.f32 %v347_v58, %v325_v46 }
 0x126   : > { %v328_v56 = vmul.f32 %v327_v50, %v326_v49  ;;  %v349_v62 = vmul.f32 %v348_v61, %v346_v59 }
 0x128   : > { %v344_v60 = vsub.f32 %v343_v57, %v328_v56 }
 0x12a   : > { %520 = vrcp.f32 %v344_v60 }
 0x12b   : > { %522 = vrcp.f32 %v349_v62 }
 0x130   : > { %v521_v63 = vpop.eup %520 }
 0x131   : > { %v351_v4 = vmul.f32 %v521_v63, %v344_v60  ;;  %v523_v5 = vpop.eup %522 }
 0x132   : > { %v357_v9 = vmul.f32 %v523_v5, %v349_v62 }
 0x133   : > { %v352_v8 = vsub.f32 2.0, %v351_v4 }
 0x134   : > { %v358_v14 = vsub.f32 2.0, %v357_v9 }
 0x135   : > { %v353_v13 = vmul.f32 %v521_v63, %v352_v8 }
 0x136   : > { %v359_v19 = vmul.f32 %v523_v5, %v358_v14 }
 0x137   : > { %v354_v18 = vmul.f32 %v353_v13, %v328_v56 }
 0x138   : > { %v360_v23 = vmul.f32 %v359_v19, %v344_v60 }
 0x139   : > { %v355_v22 = vsub.f32 1.0, %v354_v18 }
 0x13b   : > { %v361_v27 = vsub.f32 %v355_v22, %v360_v23 }
 0x19b   : > { %v282_v25 = vpop.f32.mrf.mxu0 }
 0x19c   : > { %v283_v26 = vadd.f32 %v282_v25, %v261_v24 }
 0x19e   : > { %v362_v28 = vadd.f32 %v361_v27, %v283_v26 }
 0x1a0   : > { %363 = vst [vmem:[%s201_s30] sm:$0xff] %v362_v28 }
 0x1a1   : > { %551 = shalt.err (!%p548_p3)
}
 0x1a2   : > { %463 = dma.vmem_to_hbm [thread:$0]  (%p657_p5), %s378_s5, 128, %s380_s6, %s365_s19  }
 0x1a3 PF: > { %p469_p4 = scmp.ge.s32.totalorder %s586_s18, 2  ;;  %s391_s14 = sand.u32 1, %s574_s15  }
 0x1a4   : > { %s392_s20 = scalar_lea.sflag [#allocation3], %s391_s14 }
 0x1a5   : > { %p466_p7 = pnand %p469_p4, %p661_p6 }
 0x1a7   : > { %p467_p8 = pneg %p466_p7 }
 0x1a9   : > { %569 = dma.done.wait (%p467_p8), %s392_s20, 128  }
 0x1aa   : > { %571 = vsyncadd (%p467_p8), %s392_s20, 4294967168  ;;  %p14_p9 = scmp.ge.s32.totalorder %s644_s21, 4   ;;  %s723_s15 = smov %s578_s16 }
 0x1ab   : > { %s724_s16 = smov %s582_s17  ;;  %s725_s17 = smov %s655_s24 }
 0x1ac   : > { %s726_s18 = smov %s644_s21  ;;  %16 = sbr.rel (!%p14_p9) target bundleno = 3 (0x3), region = 74 }
 0x1b1   :  { %398 = vsyncpa [#allocation3], 1 }
 0x1b2   :  { %400 = vsyncpa [#allocation3 + $0x1], 1 }

</bundles_post_ra>
